<compile_context>
chip_gen: v7x
topology: tpu7x:2x2x1
jax: 0.10.0
libtpu: 0.0.40
codegen_flags: <defaults>
</compile_context>

<pallas_src>
import jax
import jax.numpy as jnp
from jax.experimental import pallas as pl
from jax.experimental.pallas import tpu as pltpu

_LANES = 128
# 1024 rows * 128 lanes * 4 B (f32) = 512 KiB per buffer; with double
# buffering this is comfortably inside scoped VMEM on v5e / v6e / v7x.
_MAX_TILE_ROWS = 1024


def _identity_kernel(x_ref, o_ref):
    # Whole tile resident in VMEM; single full-width vector copy.
    o_ref[...] = x_ref[...]


def _pallas_identity_2d(x2d: jax.Array, tile_rows: int) -> jax.Array:
    rows, lanes = x2d.shape
    grid = (pl.cdiv(rows, tile_rows),)
    return pl.pallas_call(
        _identity_kernel,
        out_shape=jax.ShapeDtypeStruct(x2d.shape, x2d.dtype),
        grid=grid,
        in_specs=[pl.BlockSpec((tile_rows, lanes), lambda i: (i, 0))],
        out_specs=pl.BlockSpec((tile_rows, lanes), lambda i: (i, 0)),
        # Identity payload: alias input buffer to output buffer so XLA can
        # reuse the storage instead of paying a full HBM read + write.
        input_output_aliases={0: 0},
        compiler_params=pltpu.CompilerParams(
            dimension_semantics=("parallel",),
        ),
    )(x2d)


@jax.jit
def encoder_forward(x: jax.Array) -> jax.Array:
    """Pallas lowering of Encoder.forward (identity pass-through payload)."""
    shape = x.shape
    total = x.size

    if total % _LANES == 0:
        # Lane-dense path: last dim = 128 lanes -> unmasked full-width stores.
        rows = total // _LANES
        x2d = x.reshape(rows, _LANES)
        # tile_rows == rows (full dim, always legal) when small, otherwise a
        # multiple-of-8 tile that keeps the pipeline double-buffered.
        tile_rows = min(_MAX_TILE_ROWS, rows)
    else:
        # Fallback for awkward sizes: full-array single block (block_shape ==
        # array dims is always legal under the (8,128) rule).
        x2d = x.reshape(-1, shape[-1])
        tile_rows = x2d.shape[0]

    out2d = _pallas_identity_2d(x2d, tile_rows)
    return out2d.reshape(shape)


if __name__ == "__main__":
    key = jax.random.PRNGKey(0)
    # Small NCHW input consistent with a conv-style encoder interface.
    x = jax.random.normal(key, (2, 4, 16, 16), dtype=jnp.float32)

    y = encoder_forward(x)
    jax.block_until_ready(y)

    # Sanity check: identity payload must reproduce the input exactly.
    assert y.shape == x.shape
    assert bool(jnp.all(y == x))

    print("KERNEL_OK")
</pallas_src>

<mosaic_0001>
module attributes {stable_mosaic.version = 11 : i64} {
  func.func @_identity_kernel(%arg0: i32, %arg1: memref<16x128xf32, #tpu.memory_space<vmem>>, %arg2: memref<16x128xf32, #tpu.memory_space<vmem>>) attributes {dimension_semantics = [#tpu.dimension_semantics<parallel>], iteration_bounds = array<i64: 1>, scalar_prefetch = 0 : i64, scratch_operands = 0 : i64, tpu.core_type = #tpu.core_type<tc>, window_params = [{transform_indices = @transform_0, window_bounds = array<i64: 16, 128>}, {transform_indices = @transform_1, window_bounds = array<i64: 16, 128>}]} {
    %c0 = arith.constant 0 : index
    %c0_0 = arith.constant 0 : index
    %0 = vector.load %arg1[%c0, %c0_0] : memref<16x128xf32, #tpu.memory_space<vmem>>, vector<16x128xf32>
    %c0_1 = arith.constant 0 : index
    %c0_2 = arith.constant 0 : index
    %1 = vector.load %arg2[%c0_1, %c0_2] : memref<16x128xf32, #tpu.memory_space<vmem>>, vector<16x128xf32>
    tpu.vector_store %arg2[%c0_1, %c0_2], %0 {strides = array<i32>} : memref<16x128xf32, #tpu.memory_space<vmem>>, vector<16x128xf32>,
    return
  }
  func.func @transform_0(%arg0: i32) -> (i32, i32) {
    %c0_i32 = arith.constant 0 : i32
    %c0_i32_0 = arith.constant 0 : i32
    return %arg0, %c0_i32 : i32, i32
  }
  func.func @transform_1(%arg0: i32) -> (i32, i32) {
    %c0_i32 = arith.constant 0 : i32
    %c0_i32_0 = arith.constant 0 : i32
    return %arg0, %c0_i32 : i32, i32
  }
}

</mosaic_0001>

<bundles_post_ra>
// kernel: encoder_forward.1
= control target key start
LH: loop header
LB: loop body
LE: loop exit
PB: predicated region body
PF: predicated region fallthrough
CT: control target
= control target key end

     0   :  { %s38_s0 = inlined_call_operand.vmem [shape: f32[16,128], index: 0, kind: input, shape index: {}, may-alias: {0,1}]   ;;  %s39_s1 = inlined_call_operand.vmem [shape: f32[16,128], index: 1, kind: output, shape index: {}, may-alias: {0,1}]  }
   0x1   :  { %v8_v0 = vld [vmem:[%s38_s0] sm:$0xff]  ;;  %v9_v1 = vld [vmem:[%s38_s0 + $0x8] sm:$0xff] }
   0x2   :  { %10 = vst [vmem:[%s39_s1] sm:$0xff] %v8_v0  ;;  %11 = vst [vmem:[%s39_s1 + $0x8] sm:$0xff] %v9_v1 }

</bundles_post_ra>
